<compile_context>
chip_gen: v7x
topology: tpu7x:2x2x1
jax: 0.10.0
libtpu: 0.0.40
codegen_flags: <defaults>
</compile_context>

<pallas_src>
import functools
import math

import jax
import jax.numpy as jnp
from jax import lax
from jax.experimental import pallas as pl
from jax.experimental.pallas import tpu as pltpu

EPS = 1e-5
# Finite large-negative mask value: avoids (-inf) - (-inf) = NaN for fully
# masked rows while still underflowing exp() to exactly 0 for masked entries.
# Score/bias math stays f32 so stacking two MASK_VALs (-2e30) remains finite.
MASK_VAL = -1e30

TM_CAP = 256
TN_CAP = 256
TK_CAP = 512
ATTN_TILE_CAP = 256
EMBED_BLOCK_CAP = 32
# Budget for the LN-fused path: double-buffered f32 (tm, K) x tile + bf16 cache.
LN_X_BUDGET_BYTES = 24 * 1024 * 1024


def _tile(dim, cap):
    """Largest tile <= cap dividing dim; prefers multiples of 128, falls back
    to the full dim when nothing divides (small / awkward shapes)."""
    if dim <= cap:
        return dim
    t = (cap // 128) * 128
    while t >= 128:
        if dim % t == 0:
            return t
        t -= 128
    for t in (64, 32, 16, 8):
        if t <= cap and dim % t == 0:
            return t
    return dim


def _gelu_tanh(x):
    # GPT-2 "gelu_new" (tanh approximation), f32 math.
    c = math.sqrt(2.0 / math.pi)
    return 0.5 * x * (1.0 + jnp.tanh(c * (x + 0.044715 * x * x * x)))


# ------------------------------------------------------------------ embedding

def _embed_kernel(ids_ref, wte_hbm, wpe_ref, o_ref, rows, sems, *, tokens):
    """One grid step = `tokens` rows: manual row DMAs from wte (HBM) into a
    (tokens, D) VMEM scratch, then a single aligned (tokens, D) store."""
    base = pl.program_id(0) * tokens
    for t in range(tokens):                       # static unroll; issue all DMAs
        pltpu.make_async_copy(
            wte_hbm.at[pl.ds(ids_ref[base + t], 1)],
            rows.at[pl.ds(t, 1)],
            sems.at[t]).start()
    for t in range(tokens):                       # then wait for all of them
        pltpu.make_async_copy(
            wte_hbm.at[pl.ds(ids_ref[base + t], 1)],
            rows.at[pl.ds(t, 1)],
            sems.at[t]).wait()
    o_ref[...] = rows[...] + wpe_ref[...]


def embed(input_ids, wte, wpe, batch, seq):
    """Token + position embedding; blocked manual-DMA gather (no one-hot)."""
    M = batch * seq
    D = wte.shape[1]
    ids = input_ids.reshape(M).astype(jnp.int32)
    T = _tile(seq, EMBED_BLOCK_CAP)               # divides seq -> blocks never
    n_blocks = M // T                             # cross a sequence boundary
    seq_blocks = seq // T

    grid_spec = pltpu.PrefetchScalarGridSpec(
        num_scalar_prefetch=1,
        grid=(n_blocks,),
        in_specs=[
            pl.BlockSpec(memory_space=pl.ANY),                       # wte in HBM
            pl.BlockSpec((T, D), lambda i, ids: (i % seq_blocks, 0)),  # wpe block
        ],
        out_specs=pl.BlockSpec((T, D), lambda i, ids: (i, 0)),
        scratch_shapes=[pltpu.VMEM((T, D), jnp.float32),
                        pltpu.SemaphoreType.DMA((T,))],
    )
    return pl.pallas_call(
        functools.partial(_embed_kernel, tokens=T),
        out_shape=jax.ShapeDtypeStruct((M, D), jnp.float32),
        grid_spec=grid_spec,
        compiler_params=pltpu.CompilerParams(dimension_semantics=("parallel",)),
    )(ids, wte, wpe)


# ------------------------------------------------------------------ layernorm

def _layernorm_kernel(x_ref, g_ref, b_ref, o_ref, *, eps):
    x = x_ref[...].astype(jnp.float32)
    mean = jnp.mean(x, axis=-1, keepdims=True)
    xc = x - mean
    var = jnp.mean(xc * xc, axis=-1, keepdims=True)      # biased, like torch LN
    o_ref[...] = (xc * lax.rsqrt(var + eps) * g_ref[...] + b_ref[...]).astype(o_ref.dtype)


def layernorm(x2d, g, b):
    M, D = x2d.shape
    tm = _tile(M, TM_CAP)
    return pl.pallas_call(
        functools.partial(_layernorm_kernel, eps=EPS),
        out_shape=jax.ShapeDtypeStruct((M, D), jnp.float32),
        grid=(M // tm,),
        in_specs=[pl.BlockSpec((tm, D), lambda i: (i, 0)),
                  pl.BlockSpec((1, D), lambda i: (0, 0)),
                  pl.BlockSpec((1, D), lambda i: (0, 0))],
        out_specs=pl.BlockSpec((tm, D), lambda i: (i, 0)),
        compiler_params=pltpu.CompilerParams(dimension_semantics=("parallel",)),
    )(x2d, g.reshape(1, D), b.reshape(1, D))


# ------------------------------------------------------------------ fused matmul

def _fused_matmul_kernel(*refs, ln, gelu, add_residual, eps):
    """out = [residual +] [gelu]( LN?(x) @ w + b ), K-tiled with f32 accumulator.
    When ln=True, the normalized bf16 x is computed once per row-block (j == 0)
    into a VMEM cache and reused across all N tiles."""
    it = iter(refs)
    x_ref, w_ref, b_ref = next(it), next(it), next(it)
    g_ref = be_ref = res_ref = None
    if ln:
        g_ref, be_ref = next(it), next(it)
    if add_residual:
        res_ref = next(it)
    o_ref = next(it)
    acc_ref = next(it)
    xn_ref = next(it) if ln else None

    j = pl.program_id(1)
    k = pl.program_id(2)

    if ln:
        # LN needs whole rows: the wrapper forces tk == K when ln=True.
        @pl.when(jnp.logical_and(j == 0, k == 0))
        def _():
            x = x_ref[...].astype(jnp.float32)
            mean = jnp.mean(x, axis=-1, keepdims=True)
            xc = x - mean
            var = jnp.mean(xc * xc, axis=-1, keepdims=True)
            xn_ref[...] = (xc * lax.rsqrt(var + eps) * g_ref[...]
                           + be_ref[...]).astype(jnp.bfloat16)

    @pl.when(k == 0)
    def _():
        acc_ref[...] = jnp.zeros_like(acc_ref)

    xb = xn_ref[...] if ln else x_ref[...].astype(jnp.bfloat16)
    acc_ref[...] += jnp.dot(xb, w_ref[...], preferred_element_type=jnp.float32)

    @pl.when(k == pl.num_programs(2) - 1)
    def _():
        y = acc_ref[...] + b_ref[...]
        if gelu:
            y = _gelu_tanh(y)
        if add_residual:
            y = y + res_ref[...].astype(jnp.float32)
        o_ref[...] = y.astype(o_ref.dtype)


def fused_matmul(x, w, b, *, ln=None, gelu=False, residual=None,
                 out_dtype=jnp.float32):
    M, K = x.shape
    Kw, N = w.shape
    assert K == Kw
    if ln is not None:
        tk = K                                            # LN fusion needs full rows
        x_row_bytes = K * (2 * x.dtype.itemsize + 2)      # dbl-buffered x + bf16 cache
        tm_cap = min(TM_CAP, max(8, LN_X_BUDGET_BYTES // x_row_bytes))
        tm = _tile(M, tm_cap)
    else:
        tk = _tile(K, TK_CAP)
        tm = _tile(M, TM_CAP)
    tn = _tile(N, TN_CAP)
    grid = (M // tm, N // tn, K // tk)

    in_specs = [
        pl.BlockSpec((tm, tk), lambda i, j, k: (i, k)),
        pl.BlockSpec((tk, tn), lambda i, j, k: (k, j)),
        pl.BlockSpec((1, tn), lambda i, j, k: (0, j)),
    ]
    args = [x, w, b.reshape(1, N)]
    if ln is not None:
        g, be = ln
        in_specs += [pl.BlockSpec((1, tk), lambda i, j, k: (0, 0)),
                     pl.BlockSpec((1, tk), lambda i, j, k: (0, 0))]
        args += [g.reshape(1, K), be.reshape(1, K)]
    if residual is not None:
        in_specs.append(pl.BlockSpec((tm, tn), lambda i, j, k: (i, j)))
        args.append(residual)

    scratch_shapes = [pltpu.VMEM((tm, tn), jnp.float32)]
    if ln is not None:
        scratch_shapes.append(pltpu.VMEM((tm, K), jnp.bfloat16))

    # Size the scoped-VMEM limit from the actual tiles (double-buffered inputs
    # and outputs + scratch), clamped to a range safe on v5e/v6e/v7x.
    est = 2 * (tm * tk * x.dtype.itemsize
               + tk * tn * w.dtype.itemsize
               + tm * tn * jnp.dtype(out_dtype).itemsize
               + tn * 4)
    if ln is not None:
        est += 2 * 2 * K * 4 + tm * K * 2
    if residual is not None:
        est += 2 * tm * tn * residual.dtype.itemsize
    est += tm * tn * 4
    vmem_limit = int(min(max(int(est * 1.5), 32 * 1024 * 1024), 64 * 1024 * 1024))

    # With LN caching, the j (N-tile) axis must run sequentially per row block.
    dims = ("parallel", "arbitrary" if ln is not None else "parallel", "arbitrary")

    kernel = functools.partial(_fused_matmul_kernel, ln=ln is not None,
                               gelu=gelu, add_residual=residual is not None,
                               eps=EPS)
    return pl.pallas_call(
        kernel,
        out_shape=jax.ShapeDtypeStruct((M, N), out_dtype),
        grid=grid,
        in_specs=in_specs,
        out_specs=pl.BlockSpec((tm, tn), lambda i, j, k: (i, j)),
        scratch_shapes=scratch_shapes,
        compiler_params=pltpu.CompilerParams(
            dimension_semantics=dims, vmem_limit_bytes=vmem_limit),
    )(*args)


# ------------------------------------------------------------------ attention

def _flash_attn_kernel(q_ref, k_ref, v_ref, bias_ref, o_ref,
                       m_sc, l_sc, acc_sc, *, scale, tq, tk):
    """Flash-style causal attention for one (batch, head, q-tile); streams K/V
    tiles along the last grid axis with online-softmax scratch."""
    qi = pl.program_id(2)
    ki = pl.program_id(3)

    @pl.when(ki == 0)
    def _():
        m_sc[...] = jnp.full_like(m_sc, -jnp.inf)
        l_sc[...] = jnp.zeros_like(l_sc)
        acc_sc[...] = jnp.zeros_like(acc_sc)

    # Skip K/V tiles that lie entirely above the causal diagonal.
    @pl.when(ki * tk <= (qi + 1) * tq - 1)
    def _():
        # Fold the 1/sqrt(Dh) scale into q (tiny (tq, Dh) multiply, not (tq, tk)).
        q = (q_ref[0, 0].astype(jnp.float32) * scale).astype(jnp.bfloat16)
        kk = k_ref[0, 0]
        s = lax.dot_general(q, kk, (((1,), (1,)), ((), ())),
                            preferred_element_type=jnp.float32)     # (tq, tk)
        row = qi * tq + lax.broadcasted_iota(jnp.int32, (tq, tk), 0)
        col = ki * tk + lax.broadcasted_iota(jnp.int32, (tq, tk), 1)
        s = s + jnp.where(col <= row, 0.0, MASK_VAL) + bias_ref[0]   # pad bias (1, tk)

        m_prev = m_sc[...]
        m_new = jnp.maximum(m_prev, jnp.max(s, axis=-1, keepdims=True))
        alpha = jnp.exp(m_prev - m_new)
        p = jnp.exp(s - m_new)                                        # f32 softmax
        l_sc[...] = alpha * l_sc[...] + jnp.sum(p, axis=-1, keepdims=True)
        acc_sc[...] = alpha * acc_sc[...] + jnp.dot(
            p.astype(jnp.bfloat16), v_ref[0, 0], preferred_element_type=jnp.float32)
        m_sc[...] = m_new

    @pl.when(ki == pl.num_programs(3) - 1)
    def _():
        o_ref[0, 0] = (acc_sc[...]
                       * pl.reciprocal(l_sc[...], approx=True)).astype(o_ref.dtype)


def flash_attention(q, k, v, pad_bias):
    """q/k/v: (B, H, S, Dh) bf16; pad_bias: (B, 1, S) additive f32 -> (B, H, S, Dh)."""
    B, H, S, Dh = q.shape
    scale = 1.0 / math.sqrt(Dh)
    tq = _tile(S, ATTN_TILE_CAP)
    tk = _tile(S, ATTN_TILE_CAP)
    grid = (B, H, S // tq, S // tk)
    kernel = functools.partial(_flash_attn_kernel, scale=scale, tq=tq, tk=tk)
    return pl.pallas_call(
        kernel,
        out_shape=jax.ShapeDtypeStruct((B, H, S, Dh), jnp.bfloat16),
        grid=grid,
        in_specs=[
            pl.BlockSpec((1, 1, tq, Dh), lambda b, h, qi, ki: (b, h, qi, 0)),
            pl.BlockSpec((1, 1, tk, Dh), lambda b, h, qi, ki: (b, h, ki, 0)),
            pl.BlockSpec((1, 1, tk, Dh), lambda b, h, qi, ki: (b, h, ki, 0)),
            pl.BlockSpec((1, 1, tk), lambda b, h, qi, ki: (b, 0, ki)),
        ],
        out_specs=pl.BlockSpec((1, 1, tq, Dh), lambda b, h, qi, ki: (b, h, qi, 0)),
        scratch_shapes=[pltpu.VMEM((tq, 1), jnp.float32),
                        pltpu.VMEM((tq, 1), jnp.float32),
                        pltpu.VMEM((tq, Dh), jnp.float32)],
        compiler_params=pltpu.CompilerParams(
            dimension_semantics=("parallel", "parallel", "parallel", "arbitrary")),
    )(q, k, v, pad_bias)


# ------------------------------------------------------------------ block / model

def block_forward(h2d, p, pad_bias, n_head, batch, seq):
    M, D = h2d.shape
    Dh = D // n_head

    # attention: qkv = LN1(h) @ Wqkv + b      (LN + bias fused; bf16 intermediate)
    qkv = fused_matmul(h2d, p["w_qkv"], p["b_qkv"],
                       ln=(p["ln1_g"], p["ln1_b"]), out_dtype=jnp.bfloat16)
    # one shared head-major layout feeds both attention and "present".
    qkv_h = qkv.reshape(batch, seq, 3, n_head, Dh).transpose(2, 0, 3, 1, 4)  # (3,B,H,S,Dh)
    a = flash_attention(qkv_h[0], qkv_h[1], qkv_h[2], pad_bias)              # (B,H,S,Dh)
    a2d = a.transpose(0, 2, 1, 3).reshape(M, D)                              # (M,D) bf16

    # h = h + a @ Waproj + b                  (residual fused)
    h2d = fused_matmul(a2d, p["w_aproj"], p["b_aproj"],
                       residual=h2d, out_dtype=jnp.float32)
    # mlp: ff = gelu(LN2(h) @ Wfc + b)        (LN + bias + GELU fused)
    ff = fused_matmul(h2d, p["w_fc"], p["b_fc"],
                      ln=(p["ln2_g"], p["ln2_b"]), gelu=True,
                      out_dtype=jnp.bfloat16)
    # h = h + ff @ Wfproj + b                 (residual fused)
    h2d = fused_matmul(ff, p["w_fproj"], p["b_fproj"],
                       residual=h2d, out_dtype=jnp.float32)

    # "present" = stacked K/V, (2, B, H, S, Dh); already head-major, kept bf16.
    present = qkv_h[1:]
    return h2d, present


def transformer_forward(params, input_ids, attention_mask=None):
    B, S = input_ids.shape
    D = params["wte"].shape[1]
    H = params["n_head"]

    # position ids = arange(S) (past_key_values is None); dropout == identity.
    h = embed(input_ids, params["wte"], params["wpe"], B, S)          # (M, D) f32

    if attention_mask is None:
        pad_bias = jnp.zeros((B, 1, S), jnp.float32)
    else:
        pad_bias = ((1.0 - attention_mask.reshape(B, S).astype(jnp.float32))
                    * MASK_VAL).reshape(B, 1, S)

    presents, attns, hiddens = (), (), ()
    for p in params["blocks"]:
        h, present = block_forward(h, p, pad_bias, H, B, S)
        presents = presents + (present,)
        attns = attns + (present,)      # reference stores outputs[1] in both tuples

    h = layernorm(h, params["lnf_g"], params["lnf_b"]).reshape(B, S, D)
    hiddens = hiddens + (h,)

    return {
        "last_hidden_state": h,
        "past_key_values": presents,
        "hidden_states": hiddens,
        "attentions": attns,
        "cross_attentions": (),
    }


# ------------------------------------------------------------------ parameter init

def init_params(key, vocab, n_positions, n_embd, n_head, n_layer):
    D = n_embd
    keys = jax.random.split(key, 2 + 6 * n_layer)

    def w(k, shape):  # weights stored bf16 for the MXU; biases/LN/embeddings f32
        return (0.02 * jax.random.normal(k, shape, jnp.float32)).astype(jnp.bfloat16)

    params = {
        "wte": 0.02 * jax.random.normal(keys[0], (vocab, D), jnp.float32),
        "wpe": 0.01 * jax.random.normal(keys[1], (n_positions, D), jnp.float32),
        "lnf_g": jnp.ones((D,), jnp.float32),
        "lnf_b": jnp.zeros((D,), jnp.float32),
        "n_head": n_head,
        "blocks": [],
    }
    ki = 2
    for _ in range(n_layer):
        k0, k1, k2, k3 = keys[ki], keys[ki + 1], keys[ki + 2], keys[ki + 3]
        ki += 6
        params["blocks"].append({
            "ln1_g": jnp.ones((D,), jnp.float32),
            "ln1_b": jnp.zeros((D,), jnp.float32),
            "w_qkv": w(k0, (D, 3 * D)),
            "b_qkv": jnp.zeros((3 * D,), jnp.float32),
            "w_aproj": w(k1, (D, D)),
            "b_aproj": jnp.zeros((D,), jnp.float32),
            "ln2_g": jnp.ones((D,), jnp.float32),
            "ln2_b": jnp.zeros((D,), jnp.float32),
            "w_fc": w(k2, (D, 4 * D)),
            "b_fc": jnp.zeros((4 * D,), jnp.float32),
            "w_fproj": w(k3, (4 * D, D)),
            "b_fproj": jnp.zeros((D,), jnp.float32),
        })
    return params


# ------------------------------------------------------------------ main

if __name__ == "__main__":
    VOCAB, N_POS, N_EMBD, N_HEAD, N_LAYER = 128, 16, 32, 4, 2
    B, S = 2, 8

    key = jax.random.PRNGKey(0)
    pkey, ikey = jax.random.split(key)
    params = init_params(pkey, VOCAB, N_POS, N_EMBD, N_HEAD, N_LAYER)

    input_ids = jax.random.randint(ikey, (B, S), 0, VOCAB, dtype=jnp.int32)
    attention_mask = jnp.ones((B, S), jnp.float32)

    out = transformer_forward(params, input_ids, attention_mask)
    out = jax.block_until_ready(out)

    assert out["last_hidden_state"].shape == (B, S, N_EMBD)
    assert len(out["past_key_values"]) == N_LAYER
    assert out["past_key_values"][0].shape == (2, B, N_HEAD, S, N_EMBD // N_HEAD)
    assert jnp.isfinite(out["last_hidden_state"]).all()
    assert all(jnp.isfinite(p.astype(jnp.float32)).all() for p in out["past_key_values"])

    print("KERNEL_OK")
</pallas_src>

<mosaic_0001>
module attributes {stable_mosaic.version = 11 : i64} {
  func.func @_embed_kernel(%arg0: i32, %arg1: memref<16xi32, #tpu.memory_space<smem>>, %arg2: memref<128x32xf32, #tpu.memory_space<any>>, %arg3: memref<8x32xf32, #tpu.memory_space<vmem>>, %arg4: memref<8x32xf32, #tpu.memory_space<vmem>>, %arg5: memref<8x32xf32, #tpu.memory_space<vmem>>, %arg6: memref<8x!tpu.dma_semaphore, #tpu.memory_space<semaphore_mem>>) attributes {dimension_semantics = [#tpu.dimension_semantics<parallel>], iteration_bounds = array<i64: 2>, scalar_prefetch = 1 : i64, scratch_operands = 2 : i64, tpu.core_type = #tpu.core_type<tc>, window_params = [{}, {transform_indices = @transform_1, window_bounds = array<i64: 8, 32>}, {transform_indices = @transform_2, window_bounds = array<i64: 8, 32>}]} {
    %c8_i32 = arith.constant 8 : i32
    %0 = arith.muli %arg0, %c8_i32 : i32
    %c0_i32 = arith.constant 0 : i32
    %1 = arith.addi %0, %c0_i32 : i32
    %2 = arith.index_cast %1 : i32 to index
    %3 = memref.load %arg1[%2] : memref<16xi32, #tpu.memory_space<smem>>
    %c0_i32_0 = arith.constant 0 : i32
    %c0_i32_1 = arith.constant 0 : i32
    %4 = tpu.memref_slice %arg2[%3, %c0_i32_1] : memref<128x32xf32, #tpu.memory_space<any>> -> memref<1x32xf32, #tpu.memory_space<any>>
    %c0_i32_2 = arith.constant 0 : i32
    %c0_i32_3 = arith.constant 0 : i32
    %5 = tpu.memref_slice %arg5[%c0_i32_2, %c0_i32_3] : memref<8x32xf32, #tpu.memory_space<vmem>> -> memref<1x32xf32, #tpu.memory_space<vmem>>
    %6 = tpu.memref_slice %arg6[%c0_i32_0] : memref<8x!tpu.dma_semaphore, #tpu.memory_space<semaphore_mem>> -> memref<1x!tpu.dma_semaphore, #tpu.memory_space<semaphore_mem>>
    %7 = tpu.memref_squeeze %6 : memref<1x!tpu.dma_semaphore, #tpu.memory_space<semaphore_mem>> -> memref<!tpu.dma_semaphore, #tpu.memory_space<semaphore_mem>>
    tpu.enqueue_dma source(%4 : memref<1x32xf32, #tpu.memory_space<any>>) target(%5 : memref<1x32xf32, #tpu.memory_space<vmem>>) target_semaphore(%7 : memref<!tpu.dma_semaphore, #tpu.memory_space<semaphore_mem>>)
    %c1_i32 = arith.constant 1 : i32
    %8 = arith.addi %0, %c1_i32 : i32
    %9 = arith.index_cast %8 : i32 to index
    %10 = memref.load %arg1[%9] : memref<16xi32, #tpu.memory_space<smem>>
    %c1_i32_4 = arith.constant 1 : i32
    %c0_i32_5 = arith.constant 0 : i32
    %11 = tpu.memref_slice %arg2[%10, %c0_i32_5] : memref<128x32xf32, #tpu.memory_space<any>> -> memref<1x32xf32, #tpu.memory_space<any>>
    %c1_i32_6 = arith.constant 1 : i32
    %c0_i32_7 = arith.constant 0 : i32
    %12 = tpu.memref_slice %arg5[%c1_i32_6, %c0_i32_7] : memref<8x32xf32, #tpu.memory_space<vmem>> -> memref<1x32xf32, #tpu.memory_space<vmem>>
    %13 = tpu.memref_slice %arg6[%c1_i32_4] : memref<8x!tpu.dma_semaphore, #tpu.memory_space<semaphore_mem>> -> memref<1x!tpu.dma_semaphore, #tpu.memory_space<semaphore_mem>>
    %14 = tpu.memref_squeeze %13 : memref<1x!tpu.dma_semaphore, #tpu.memory_space<semaphore_mem>> -> memref<!tpu.dma_semaphore, #tpu.memory_space<semaphore_mem>>
    tpu.enqueue_dma source(%11 : memref<1x32xf32, #tpu.memory_space<any>>) target(%12 : memref<1x32xf32, #tpu.memory_space<vmem>>) target_semaphore(%14 : memref<!tpu.dma_semaphore, #tpu.memory_space<semaphore_mem>>)
    %c2_i32 = arith.constant 2 : i32
    %15 = arith.addi %0, %c2_i32 : i32
    %16 = arith.index_cast %15 : i32 to index
    %17 = memref.load %arg1[%16] : memref<16xi32, #tpu.memory_space<smem>>
    %c2_i32_8 = arith.constant 2 : i32
    %c0_i32_9 = arith.constant 0 : i32
    %18 = tpu.memref_slice %arg2[%17, %c0_i32_9] : memref<128x32xf32, #tpu.memory_space<any>> -> memref<1x32xf32, #tpu.memory_space<any>>
    %c2_i32_10 = arith.constant 2 : i32
    %c0_i32_11 = arith.constant 0 : i32
    %19 = tpu.memref_slice %arg5[%c2_i32_10, %c0_i32_11] : memref<8x32xf32, #tpu.memory_space<vmem>> -> memref<1x32xf32, #tpu.memory_space<vmem>>
    %20 = tpu.memref_slice %arg6[%c2_i32_8] : memref<8x!tpu.dma_semaphore, #tpu.memory_space<semaphore_mem>> -> memref<1x!tpu.dma_semaphore, #tpu.memory_space<semaphore_mem>>
    %21 = tpu.memref_squeeze %20 : memref<1x!tpu.dma_semaphore, #tpu.memory_space<semaphore_mem>> -> memref<!tpu.dma_semaphore, #tpu.memory_space<semaphore_mem>>
    tpu.enqueue_dma source(%18 : memref<1x32xf32, #tpu.memory_space<any>>) target(%19 : memref<1x32xf32, #tpu.memory_space<vmem>>) target_semaphore(%21 : memref<!tpu.dma_semaphore, #tpu.memory_space<semaphore_mem>>)
    %c3_i32 = arith.constant 3 : i32
    %22 = arith.addi %0, %c3_i32 : i32
    %23 = arith.index_cast %22 : i32 to index
    %24 = memref.load %arg1[%23] : memref<16xi32, #tpu.memory_space<smem>>
    %c3_i32_12 = arith.constant 3 : i32
    %c0_i32_13 = arith.constant 0 : i32
    %25 = tpu.memref_slice %arg2[%24, %c0_i32_13] : memref<128x32xf32, #tpu.memory_space<any>> -> memref<1x32xf32, #tpu.memory_space<any>>
    %c3_i32_14 = arith.constant 3 : i32
    %c0_i32_15 = arith.constant 0 : i32
    %26 = tpu.memref_slice %arg5[%c3_i32_14, %c0_i32_15] : memref<8x32xf32, #tpu.memory_space<vmem>> -> memref<1x32xf32, #tpu.memory_space<vmem>>
    %27 = tpu.memref_slice %arg6[%c3_i32_12] : memref<8x!tpu.dma_semaphore, #tpu.memory_space<semaphore_mem>> -> memref<1x!tpu.dma_semaphore, #tpu.memory_space<semaphore_mem>>
    %28 = tpu.memref_squeeze %27 : memref<1x!tpu.dma_semaphore, #tpu.memory_space<semaphore_mem>> -> memref<!tpu.dma_semaphore, #tpu.memory_space<semaphore_mem>>
    tpu.enqueue_dma source(%25 : memref<1x32xf32, #tpu.memory_space<any>>) target(%26 : memref<1x32xf32, #tpu.memory_space<vmem>>) target_semaphore(%28 : memref<!tpu.dma_semaphore, #tpu.memory_space<semaphore_mem>>)
    %c4_i32 = arith.constant 4 : i32
    %29 = arith.addi %0, %c4_i32 : i32
    %30 = arith.index_cast %29 : i32 to index
    %31 = memref.load %arg1[%30] : memref<16xi32, #tpu.memory_space<smem>>
    %c4_i32_16 = arith.constant 4 : i32
    %c0_i32_17 = arith.constant 0 : i32
    %32 = tpu.memref_slice %arg2[%31, %c0_i32_17] : memref<128x32xf32, #tpu.memory_space<any>> -> memref<1x32xf32, #tpu.memory_space<any>>
    %c4_i32_18 = arith.constant 4 : i32
    %c0_i32_19 = arith.constant 0 : i32
    %33 = tpu.memref_slice %arg5[%c4_i32_18, %c0_i32_19] : memref<8x32xf32, #tpu.memory_space<vmem>> -> memref<1x32xf32, #tpu.memory_space<vmem>>
    %34 = tpu.memref_slice %arg6[%c4_i32_16] : memref<8x!tpu.dma_semaphore, #tpu.memory_space<semaphore_mem>> -> memref<1x!tpu.dma_semaphore, #tpu.memory_space<semaphore_mem>>
    %35 = tpu.memref_squeeze %34 : memref<1x!tpu.dma_semaphore, #tpu.memory_space<semaphore_mem>> -> memref<!tpu.dma_semaphore, #tpu.memory_space<semaphore_mem>>
    tpu.enqueue_dma source(%32 : memref<1x32xf32, #tpu.memory_space<any>>) target(%33 : memref<1x32xf32, #tpu.memory_space<vmem>>) target_semaphore(%35 : memref<!tpu.dma_semaphore, #tpu.memory_space<semaphore_mem>>)
    %c5_i32 = arith.constant 5 : i32
    %36 = arith.addi %0, %c5_i32 : i32
    %37 = arith.index_cast %36 : i32 to index
    %38 = memref.load %arg1[%37] : memref<16xi32, #tpu.memory_space<smem>>
    %c5_i32_20 = arith.constant 5 : i32
    %c0_i32_21 = arith.constant 0 : i32
    %39 = tpu.memref_slice %arg2[%38, %c0_i32_21] : memref<128x32xf32, #tpu.memory_space<any>> -> memref<1x32xf32, #tpu.memory_space<any>>
    %c5_i32_22 = arith.constant 5 : i32
    %c0_i32_23 = arith.constant 0 : i32
    %40 = tpu.memref_slice %arg5[%c5_i32_22, %c0_i32_23] : memref<8x32xf32, #tpu.memory_space<vmem>> -> memref<1x32xf32, #tpu.memory_space<vmem>>
    %41 = tpu.memref_slice %arg6[%c5_i32_20] : memref<8x!tpu.dma_semaphore, #tpu.memory_space<semaphore_mem>> -> memref<1x!tpu.dma_semaphore, #tpu.memory_space<semaphore_mem>>
    %42 = tpu.memref_squeeze %41 : memref<1x!tpu.dma_semaphore, #tpu.memory_space<semaphore_mem>> -> memref<!tpu.dma_semaphore, #tpu.memory_space<semaphore_mem>>
    tpu.enqueue_dma source(%39 : memref<1x32xf32, #tpu.memory_space<any>>) target(%40 : memref<1x32xf32, #tpu.memory_space<vmem>>) target_semaphore(%42 : memref<!tpu.dma_semaphore, #tpu.memory_space<semaphore_mem>>)
    %c6_i32 = arith.constant 6 : i32
    %43 = arith.addi %0, %c6_i32 : i32
    %44 = arith.index_cast %43 : i32 to index
    %45 = memref.load %arg1[%44] : memref<16xi32, #tpu.memory_space<smem>>
    %c6_i32_24 = arith.constant 6 : i32
    %c0_i32_25 = arith.constant 0 : i32
    %46 = tpu.memref_slice %arg2[%45, %c0_i32_25] : memref<128x32xf32, #tpu.memory_space<any>> -> memref<1x32xf32, #tpu.memory_space<any>>
    %c6_i32_26 = arith.constant 6 : i32
    %c0_i32_27 = arith.constant 0 : i32
    %47 = tpu.memref_slice %arg5[%c6_i32_26, %c0_i32_27] : memref<8x32xf32, #tpu.memory_space<vmem>> -> memref<1x32xf32, #tpu.memory_space<vmem>>
    %48 = tpu.memref_slice %arg6[%c6_i32_24] : memref<8x!tpu.dma_semaphore, #tpu.memory_space<semaphore_mem>> -> memref<1x!tpu.dma_semaphore, #tpu.memory_space<semaphore_mem>>
    %49 = tpu.memref_squeeze %48 : memref<1x!tpu.dma_semaphore, #tpu.memory_space<semaphore_mem>> -> memref<!tpu.dma_semaphore, #tpu.memory_space<semaphore_mem>>
    tpu.enqueue_dma source(%46 : memref<1x32xf32, #tpu.memory_space<any>>) target(%47 : memref<1x32xf32, #tpu.memory_space<vmem>>) target_semaphore(%49 : memref<!tpu.dma_semaphore, #tpu.memory_space<semaphore_mem>>)
    %c7_i32 = arith.constant 7 : i32
    %50 = arith.addi %0, %c7_i32 : i32
    %51 = arith.index_cast %50 : i32 to index
    %52 = memref.load %arg1[%51] : memref<16xi32, #tpu.memory_space<smem>>
    %c7_i32_28 = arith.constant 7 : i32
    %c0_i32_29 = arith.constant 0 : i32
    %53 = tpu.memref_slice %arg2[%52, %c0_i32_29] : memref<128x32xf32, #tpu.memory_space<any>> -> memref<1x32xf32, #tpu.memory_space<any>>
    %c7_i32_30 = arith.constant 7 : i32
    %c0_i32_31 = arith.constant 0 : i32
    %54 = tpu.memref_slice %arg5[%c7_i32_30, %c0_i32_31] : memref<8x32xf32, #tpu.memory_space<vmem>> -> memref<1x32xf32, #tpu.memory_space<vmem>>
    %55 = tpu.memref_slice %arg6[%c7_i32_28] : memref<8x!tpu.dma_semaphore, #tpu.memory_space<semaphore_mem>> -> memref<1x!tpu.dma_semaphore, #tpu.memory_space<semaphore_mem>>
    %56 = tpu.memref_squeeze %55 : memref<1x!tpu.dma_semaphore, #tpu.memory_space<semaphore_mem>> -> memref<!tpu.dma_semaphore, #tpu.memory_space<semaphore_mem>>
    tpu.enqueue_dma source(%53 : memref<1x32xf32, #tpu.memory_space<any>>) target(%54 : memref<1x32xf32, #tpu.memory_space<vmem>>) target_semaphore(%56 : memref<!tpu.dma_semaphore, #tpu.memory_space<semaphore_mem>>)
    %c0_i32_32 = arith.constant 0 : i32
    %57 = arith.addi %0, %c0_i32_32 : i32
    %58 = arith.index_cast %57 : i32 to index
    %59 = memref.load %arg1[%58] : memref<16xi32, #tpu.memory_space<smem>>
    %c0_i32_33 = arith.constant 0 : i32
    %c0_i32_34 = arith.constant 0 : i32
    %60 = tpu.memref_slice %arg2[%59, %c0_i32_34] : memref<128x32xf32, #tpu.memory_space<any>> -> memref<1x32xf32, #tpu.memory_space<any>>
    %c0_i32_35 = arith.constant 0 : i32
    %c0_i32_36 = arith.constant 0 : i32
    %61 = tpu.memref_slice %arg5[%c0_i32_35, %c0_i32_36] : memref<8x32xf32, #tpu.memory_space<vmem>> -> memref<1x32xf32, #tpu.memory_space<vmem>>
    %62 = tpu.memref_slice %arg6[%c0_i32_33] : memref<8x!tpu.dma_semaphore, #tpu.memory_space<semaphore_mem>> -> memref<1x!tpu.dma_semaphore, #tpu.memory_space<semaphore_mem>>
    %63 = tpu.memref_squeeze %62 : memref<1x!tpu.dma_semaphore, #tpu.memory_space<semaphore_mem>> -> memref<!tpu.dma_semaphore, #tpu.memory_space<semaphore_mem>>
    tpu.wait_dma2 semaphore(%63 : memref<!tpu.dma_semaphore, #tpu.memory_space<semaphore_mem>>) src(%60 : memref<1x32xf32, #tpu.memory_space<any>>) dst(%61 : memref<1x32xf32, #tpu.memory_space<vmem>>)
    %c1_i32_37 = arith.constant 1 : i32
    %64 = arith.addi %0, %c1_i32_37 : i32
    %65 = arith.index_cast %64 : i32 to index
    %66 = memref.load %arg1[%65] : memref<16xi32, #tpu.memory_space<smem>>
    %c1_i32_38 = arith.constant 1 : i32
    %c0_i32_39 = arith.constant 0 : i32
    %67 = tpu.memref_slice %arg2[%66, %c0_i32_39] : memref<128x32xf32, #tpu.memory_space<any>> -> memref<1x32xf32, #tpu.memory_space<any>>
    %c1_i32_40 = arith.constant 1 : i32
    %c0_i32_41 = arith.constant 0 : i32
    %68 = tpu.memref_slice %arg5[%c1_i32_40, %c0_i32_41] : memref<8x32xf32, #tpu.memory_space<vmem>> -> memref<1x32xf32, #tpu.memory_space<vmem>>
    %69 = tpu.memref_slice %arg6[%c1_i32_38] : memref<8x!tpu.dma_semaphore, #tpu.memory_space<semaphore_mem>> -> memref<1x!tpu.dma_semaphore, #tpu.memory_space<semaphore_mem>>
    %70 = tpu.memref_squeeze %69 : memref<1x!tpu.dma_semaphore, #tpu.memory_space<semaphore_mem>> -> memref<!tpu.dma_semaphore, #tpu.memory_space<semaphore_mem>>
    tpu.wait_dma2 semaphore(%70 : memref<!tpu.dma_semaphore, #tpu.memory_space<semaphore_mem>>) src(%67 : memref<1x32xf32, #tpu.memory_space<any>>) dst(%68 : memref<1x32xf32, #tpu.memory_space<vmem>>)
    %c2_i32_42 = arith.constant 2 : i32
    %71 = arith.addi %0, %c2_i32_42 : i32
    %72 = arith.index_cast %71 : i32 to index
    %73 = memref.load %arg1[%72] : memref<16xi32, #tpu.memory_space<smem>>
    %c2_i32_43 = arith.constant 2 : i32
    %c0_i32_44 = arith.constant 0 : i32
    %74 = tpu.memref_slice %arg2[%73, %c0_i32_44] : memref<128x32xf32, #tpu.memory_space<any>> -> memref<1x32xf32, #tpu.memory_space<any>>
    %c2_i32_45 = arith.constant 2 : i32
    %c0_i32_46 = arith.constant 0 : i32
    %75 = tpu.memref_slice %arg5[%c2_i32_45, %c0_i32_46] : memref<8x32xf32, #tpu.memory_space<vmem>> -> memref<1x32xf32, #tpu.memory_space<vmem>>
    %76 = tpu.memref_slice %arg6[%c2_i32_43] : memref<8x!tpu.dma_semaphore, #tpu.memory_space<semaphore_mem>> -> memref<1x!tpu.dma_semaphore, #tpu.memory_space<semaphore_mem>>
    %77 = tpu.memref_squeeze %76 : memref<1x!tpu.dma_semaphore, #tpu.memory_space<semaphore_mem>> -> memref<!tpu.dma_semaphore, #tpu.memory_space<semaphore_mem>>
    tpu.wait_dma2 semaphore(%77 : memref<!tpu.dma_semaphore, #tpu.memory_space<semaphore_mem>>) src(%74 : memref<1x32xf32, #tpu.memory_space<any>>) dst(%75 : memref<1x32xf32, #tpu.memory_space<vmem>>)
    %c3_i32_47 = arith.constant 3 : i32
    %78 = arith.addi %0, %c3_i32_47 : i32
    %79 = arith.index_cast %78 : i32 to index
    %80 = memref.load %arg1[%79] : memref<16xi32, #tpu.memory_space<smem>>
    %c3_i32_48 = arith.constant 3 : i32
    %c0_i32_49 = arith.constant 0 : i32
    %81 = tpu.memref_slice %arg2[%80, %c0_i32_49] : memref<128x32xf32, #tpu.memory_space<any>> -> memref<1x32xf32, #tpu.memory_space<any>>
    %c3_i32_50 = arith.constant 3 : i32
    %c0_i32_51 = arith.constant 0 : i32
    %82 = tpu.memref_slice %arg5[%c3_i32_50, %c0_i32_51] : memref<8x32xf32, #tpu.memory_space<vmem>> -> memref<1x32xf32, #tpu.memory_space<vmem>>
    %83 = tpu.memref_slice %arg6[%c3_i32_48] : memref<8x!tpu.dma_semaphore, #tpu.memory_space<semaphore_mem>> -> memref<1x!tpu.dma_semaphore, #tpu.memory_space<semaphore_mem>>
    %84 = tpu.memref_squeeze %83 : memref<1x!tpu.dma_semaphore, #tpu.memory_space<semaphore_mem>> -> memref<!tpu.dma_semaphore, #tpu.memory_space<semaphore_mem>>
    tpu.wait_dma2 semaphore(%84 : memref<!tpu.dma_semaphore, #tpu.memory_space<semaphore_mem>>) src(%81 : memref<1x32xf32, #tpu.memory_space<any>>) dst(%82 : memref<1x32xf32, #tpu.memory_space<vmem>>)
    %c4_i32_52 = arith.constant 4 : i32
    %85 = arith.addi %0, %c4_i32_52 : i32
    %86 = arith.index_cast %85 : i32 to index
    %87 = memref.load %arg1[%86] : memref<16xi32, #tpu.memory_space<smem>>
    %c4_i32_53 = arith.constant 4 : i32
    %c0_i32_54 = arith.constant 0 : i32
    %88 = tpu.memref_slice %arg2[%87, %c0_i32_54] : memref<128x32xf32, #tpu.memory_space<any>> -> memref<1x32xf32, #tpu.memory_space<any>>
    %c4_i32_55 = arith.constant 4 : i32
    %c0_i32_56 = arith.constant 0 : i32
    %89 = tpu.memref_slice %arg5[%c4_i32_55, %c0_i32_56] : memref<8x32xf32, #tpu.memory_space<vmem>> -> memref<1x32xf32, #tpu.memory_space<vmem>>
    %90 = tpu.memref_slice %arg6[%c4_i32_53] : memref<8x!tpu.dma_semaphore, #tpu.memory_space<semaphore_mem>> -> memref<1x!tpu.dma_semaphore, #tpu.memory_space<semaphore_mem>>
    %91 = tpu.memref_squeeze %90 : memref<1x!tpu.dma_semaphore, #tpu.memory_space<semaphore_mem>> -> memref<!tpu.dma_semaphore, #tpu.memory_space<semaphore_mem>>
    tpu.wait_dma2 semaphore(%91 : memref<!tpu.dma_semaphore, #tpu.memory_space<semaphore_mem>>) src(%88 : memref<1x32xf32, #tpu.memory_space<any>>) dst(%89 : memref<1x32xf32, #tpu.memory_space<vmem>>)
    %c5_i32_57 = arith.constant 5 : i32
    %92 = arith.addi %0, %c5_i32_57 : i32
    %93 = arith.index_cast %92 : i32 to index
    %94 = memref.load %arg1[%93] : memref<16xi32, #tpu.memory_space<smem>>
    %c5_i32_58 = arith.constant 5 : i32
    %c0_i32_59 = arith.constant 0 : i32
    %95 = tpu.memref_slice %arg2[%94, %c0_i32_59] : memref<128x32xf32, #tpu.memory_space<any>> -> memref<1x32xf32, #tpu.memory_space<any>>
    %c5_i32_60 = arith.constant 5 : i32
    %c0_i32_61 = arith.constant 0 : i32
    %96 = tpu.memref_slice %arg5[%c5_i32_60, %c0_i32_61] : memref<8x32xf32, #tpu.memory_space<vmem>> -> memref<1x32xf32, #tpu.memory_space<vmem>>
    %97 = tpu.memref_slice %arg6[%c5_i32_58] : memref<8x!tpu.dma_semaphore, #tpu.memory_space<semaphore_mem>> -> memref<1x!tpu.dma_semaphore, #tpu.memory_space<semaphore_mem>>
    %98 = tpu.memref_squeeze %97 : memref<1x!tpu.dma_semaphore, #tpu.memory_space<semaphore_mem>> -> memref<!tpu.dma_semaphore, #tpu.memory_space<semaphore_mem>>
    tpu.wait_dma2 semaphore(%98 : memref<!tpu.dma_semaphore, #tpu.memory_space<semaphore_mem>>) src(%95 : memref<1x32xf32, #tpu.memory_space<any>>) dst(%96 : memref<1x32xf32, #tpu.memory_space<vmem>>)
    %c6_i32_62 = arith.constant 6 : i32
    %99 = arith.addi %0, %c6_i32_62 : i32
    %100 = arith.index_cast %99 : i32 to index
    %101 = memref.load %arg1[%100] : memref<16xi32, #tpu.memory_space<smem>>
    %c6_i32_63 = arith.constant 6 : i32
    %c0_i32_64 = arith.constant 0 : i32
    %102 = tpu.memref_slice %arg2[%101, %c0_i32_64] : memref<128x32xf32, #tpu.memory_space<any>> -> memref<1x32xf32, #tpu.memory_space<any>>
    %c6_i32_65 = arith.constant 6 : i32
    %c0_i32_66 = arith.constant 0 : i32
    %103 = tpu.memref_slice %arg5[%c6_i32_65, %c0_i32_66] : memref<8x32xf32, #tpu.memory_space<vmem>> -> memref<1x32xf32, #tpu.memory_space<vmem>>
    %104 = tpu.memref_slice %arg6[%c6_i32_63] : memref<8x!tpu.dma_semaphore, #tpu.memory_space<semaphore_mem>> -> memref<1x!tpu.dma_semaphore, #tpu.memory_space<semaphore_mem>>
    %105 = tpu.memref_squeeze %104 : memref<1x!tpu.dma_semaphore, #tpu.memory_space<semaphore_mem>> -> memref<!tpu.dma_semaphore, #tpu.memory_space<semaphore_mem>>
    tpu.wait_dma2 semaphore(%105 : memref<!tpu.dma_semaphore, #tpu.memory_space<semaphore_mem>>) src(%102 : memref<1x32xf32, #tpu.memory_space<any>>) dst(%103 : memref<1x32xf32, #tpu.memory_space<vmem>>)
    %c7_i32_67 = arith.constant 7 : i32
    %106 = arith.addi %0, %c7_i32_67 : i32
    %107 = arith.index_cast %106 : i32 to index
    %108 = memref.load %arg1[%107] : memref<16xi32, #tpu.memory_space<smem>>
    %c7_i32_68 = arith.constant 7 : i32
    %c0_i32_69 = arith.constant 0 : i32
    %109 = tpu.memref_slice %arg2[%108, %c0_i32_69] : memref<128x32xf32, #tpu.memory_space<any>> -> memref<1x32xf32, #tpu.memory_space<any>>
    %c7_i32_70 = arith.constant 7 : i32
    %c0_i32_71 = arith.constant 0 : i32
    %110 = tpu.memref_slice %arg5[%c7_i32_70, %c0_i32_71] : memref<8x32xf32, #tpu.memory_space<vmem>> -> memref<1x32xf32, #tpu.memory_space<vmem>>
    %111 = tpu.memref_slice %arg6[%c7_i32_68] : memref<8x!tpu.dma_semaphore, #tpu.memory_space<semaphore_mem>> -> memref<1x!tpu.dma_semaphore, #tpu.memory_space<semaphore_mem>>
    %112 = tpu.memref_squeeze %111 : memref<1x!tpu.dma_semaphore, #tpu.memory_space<semaphore_mem>> -> memref<!tpu.dma_semaphore, #tpu.memory_space<semaphore_mem>>
    tpu.wait_dma2 semaphore(%112 : memref<!tpu.dma_semaphore, #tpu.memory_space<semaphore_mem>>) src(%109 : memref<1x32xf32, #tpu.memory_space<any>>) dst(%110 : memref<1x32xf32, #tpu.memory_space<vmem>>)
    %c0 = arith.constant 0 : index
    %c0_72 = arith.constant 0 : index
    %113 = vector.load %arg5[%c0, %c0_72] : memref<8x32xf32, #tpu.memory_space<vmem>>, vector<8x32xf32>
    %c0_73 = arith.constant 0 : index
    %c0_74 = arith.constant 0 : index
    %114 = vector.load %arg3[%c0_73, %c0_74] : memref<8x32xf32, #tpu.memory_space<vmem>>, vector<8x32xf32>
    %115 = arith.addf %113, %114 : vector<8x32xf32>
    %c0_75 = arith.constant 0 : index
    %c0_76 = arith.constant 0 : index
    %116 = vector.load %arg4[%c0_75, %c0_76] : memref<8x32xf32, #tpu.memory_space<vmem>>, vector<8x32xf32>
    tpu.vector_store %arg4[%c0_75, %c0_76], %115 {strides = array<i32>} : memref<8x32xf32, #tpu.memory_space<vmem>>, vector<8x32xf32>,
    return
  }
  func.func @transform_1(%arg0: i32, %arg1: memref<16xi32, #tpu.memory_space<smem>>) -> (i32, i32) {
    %c1_i32 = arith.constant 1 : i32
    %c0_i32 = arith.constant 0 : i32
    %0 = arith.cmpi eq, %c1_i32, %c0_i32 : i32
    %c1_i32_0 = arith.constant 1 : i32
    %1 = arith.select %0, %c1_i32_0, %c1_i32 : i32
    %2 = arith.remsi %arg0, %1 : i32
    %c0_i32_1 = arith.constant 0 : i32
    %3 = arith.cmpi ne, %2, %c0_i32_1 : i32
    %c0_i32_2 = arith.constant 0 : i32
    %4 = arith.cmpi slt, %2, %c0_i32_2 : i32
    %c0_i32_3 = arith.constant 0 : i32
    %5 = arith.cmpi slt, %1, %c0_i32_3 : i32
    %6 = arith.xori %4, %5 : i1
    %7 = arith.andi %6, %3 : i1
    %8 = arith.addi %2, %1 : i32
    %9 = arith.select %7, %8, %2 : i32
    %c0_i32_4 = arith.constant 0 : i32
    %c0_i32_5 = arith.constant 0 : i32
    return %9, %c0_i32_4 : i32, i32
  }
  func.func @transform_2(%arg0: i32, %arg1: memref<16xi32, #tpu.memory_space<smem>>) -> (i32, i32) {
    %c0_i32 = arith.constant 0 : i32
    %c0_i32_0 = arith.constant 0 : i32
    return %arg0, %c0_i32 : i32, i32
  }
}

</mosaic_0001>

<bundles_post_ra>
// kernel: tpu_custom_call.1
= control target key start
LH: loop header
LB: loop body
LE: loop exit
PB: predicated region body
PF: predicated region fallthrough
CT: control target
= control target key end

     0   :  { %s1054_s0 = inlined_call_operand.vmem [shape: s32[16], index: 0, kind: input, shape index: {}]   ;;  %s1055_s1 = inlined_call_operand.vmem [shape: f32[128,32], index: 1, kind: input, shape index: {}]   ;;  %s1056_s2 = inlined_call_operand.vmem [shape: f32[16,32], index: 2, kind: input, shape index: {}]   ;;  %s1057_s3 = inlined_call_operand.hbm [shape: f32[16,32], index: 3, kind: output, shape index: {}]  }
   0x1   :  { %s8_s14 = sshll.u32 %s1054_s0, 4  ;;  %s9_s14 = int_to_ptr.vmem [resolvable:$true] %s8_s14 }
   0x2   :  { %s791_s15 = scalar_lea.vmem %s9_s14, 16  ;;  %p796_p1 = scmp.lt.s32.totalorder %s9_s14, %s9_s14 }
   0x3   :  { %p792_p0 = scmp.ne.s32.totalorder %s9_s14, %s791_s15  ;;  %p797_p2 = scmp.lt.s32.totalorder %s791_s15, %s791_s15 }
   0x5   :  { %p798_p3 = por %p797_p2, %p796_p1 }
   0x7   :  { %p799_p4 = pnand %p798_p3, %p792_p0 }
   0x9   :  { %802 = shalt.err (!%p799_p4)  }
   0xa   :  { %s885_s16 = smov [#allocation5]  }
   0xb   :  { %11 = dma.vmem_to_smem %s9_s14, 16, %s885_s16, [#allocation4] }
   0xc   :  { %847 = dma.done.wait [#allocation4], 16 }
   0xd   :  { %848 = vsyncadd [#allocation4], 4294967280 }
   0xe   :  { %13 = sfence }
   0xf   :  { %14 = vsyncpa [#allocation7], 0 }
  0x10   :  { %16 = vsyncpa [#allocation7 + $0x1], 0  ;;  %s910_s17 = smov 0   ;;  %s912_s18 = smov 0  }
  0x11   :  { %s914_s0 = smov 0   ;;  %s916_s19 = smov 0  }
  0x12 LB: > { %s931_s20 = sadd.s32 4294967295, %s883_s19   ;;  %s734_s21 = sadd.s32 4294967294, %s883_s19   ;;  %s883_s19 = sphi %s916_s19, %s1063_s19   ;;  %s879_s0 = sphi %s914_s0, %s1062_s0   ;;  %s875_s18 = sphi %s912_s18, %s1061_s18   ;;  %s871_s17 = sphi %s910_s17, %s1060_s17  }
  0x13   : > { %s935_s22 = sadd.s32 1, %s883_s19   ;;  %s50_s23 = sadd.s32 1, %s879_s0 }
  0x14   : > { %s47_s24 = ssub.s32 %s883_s19, %s935_s22  ;;  %p60_p5 = scmp.ne.s32.totalorder %s879_s0, %s875_s18 }
  0x15   : > { %p48_p6 = scmp.eq.s32.totalorder %s47_s24, 0  ;;  %p61_p7 = scmp.eq.s32.totalorder %s931_s20, 1 }
  0x16   : > { %p66_p8 = scmp.ne.s32.totalorder %s875_s18, %s871_s17  ;;  %p67_p9 = scmp.eq.s32.totalorder %s734_s21, 1 }
  0x17   : > { %s946_s25 = scalar_select %p48_p6, %s879_s0, %s50_s23  }
  0x18   : > { %p948_p10 = por %p61_p7, %p60_p5  ;;  %p952_p11 = por %p67_p9, %p66_p8 }
  0x19   : > { %p736_p12 = scmp.ge.s32.totalorder %s883_s19, 1  ;;  %p88_p13 = scmp.lt.s32.totalorder %s883_s19, 3 }
  0x1b   : > { %p89_p0 = pnand %p736_p12, %p88_p13 }
  0x1c   : > { %s100_s28 = sand.u32 (!%p89_p0), 1, %s875_s18   ;;  %s960_s29 = sshll.u32 (!%p89_p0), %s931_s20, 3 }
  0x1d   : > { %92 = sbr.rel (%p89_p0) target bundleno = 149 (0x95), region = 24  ;;  %s964_s30 = sshll.u32 (!%p89_p0), %s100_s28, 3 }
  0x1e   : > { %s104_s4 = sld [smem:[#allocation5 + %s960_s29]] (!%p89_p0)  ;;  %s102_s8 = scalar_lea.vmem (!%p89_p0), [#allocation6], %s964_s30 }
  0x24   : > { %s105_s7 = scalar_lea.vmem %s1055_s1, %s104_s4 }
  0x25   : > { %v123_v0 = vld [vmem:[%s105_s7] sm:$0x1] }
  0x26   : > { %124 = vst [vmem:[#allocation2] sm:$0x1] %v123_v0 }
  0x27   : > { %149 = vsyncadd [#allocation3], 16  ;;  %s150_s9 = sadd.s32 1, %s960_s29 }
  0x28   : > { %s151_s10 = sld [smem:[#allocation5 + %s150_s9]] }
  0x2e   : > { %s152_s13 = scalar_lea.vmem %s1055_s1, %s151_s10 }
  0x2f   : > { %v172_v1 = vld [vmem:[%s152_s13] sm:$0x1] }
  0x30   : > { %173 = vst [vmem:[#allocation2 + $0x1] sm:$0x1] %v172_v1 }
  0x31   : > { %198 = vsyncadd [#allocation3 + $0x1], 16  ;;  %s199_s14 = sadd.s32 2, %s960_s29 }
  0x32   : > { %s200_s15 = sld [smem:[#allocation5 + %s199_s14]] }
  0x38   : > { %s201_s23 = scalar_lea.vmem %s1055_s1, %s200_s15 }
  0x39   : > { %v221_v2 = vld [vmem:[%s201_s23] sm:$0x1] }
  0x3a   : > { %222 = vst [vmem:[#allocation2 + $0x2] sm:$0x1] %v221_v2 }
  0x3b   : > { %247 = vsyncadd [#allocation3 + $0x2], 16  ;;  %s248_s24 = sadd.s32 3, %s960_s29 }
  0x3c   : > { %s249_s4 = sld [smem:[#allocation5 + %s248_s24]] }
  0x42   : > { %s250_s7 = scalar_lea.vmem %s1055_s1, %s249_s4 }
  0x43   : > { %v270_v3 = vld [vmem:[%s250_s7] sm:$0x1] }
  0x44   : > { %271 = vst [vmem:[#allocation2 + $0x3] sm:$0x1] %v270_v3 }
  0x45   : > { %296 = vsyncadd [#allocation3 + $0x3], 16  ;;  %s297_s9 = sadd.s32 4, %s960_s29 }
  0x46   : > { %s298_s10 = sld [smem:[#allocation5 + %s297_s9]] }
  0x4c   : > { %s299_s13 = scalar_lea.vmem %s1055_s1, %s298_s10 }
  0x4d   : > { %v319_v4 = vld [vmem:[%s299_s13] sm:$0x1] }
  0x4e   : > { %320 = vst [vmem:[#allocation2 + $0x4] sm:$0x1] %v319_v4 }
  0x4f   : > { %345 = vsyncadd [#allocation3 + $0x4], 16  ;;  %s346_s14 = sadd.s32 5, %s960_s29 }
  0x50   : > { %s347_s15 = sld [smem:[#allocation5 + %s346_s14]] }
  0x56   : > { %s348_s23 = scalar_lea.vmem %s1055_s1, %s347_s15 }
  0x57   : > { %v368_v5 = vld [vmem:[%s348_s23] sm:$0x1] }
  0x58   : > { %369 = vst [vmem:[#allocation2 + $0x5] sm:$0x1] %v368_v5 }
  0x59   : > { %394 = vsyncadd [#allocation3 + $0x5], 16  ;;  %s395_s24 = sadd.s32 6, %s960_s29 }
  0x5a   : > { %s396_s4 = sld [smem:[#allocation5 + %s395_s24]] }
  0x60   : > { %s397_s7 = scalar_lea.vmem %s1055_s1, %s396_s4 }
  0x61   : > { %v417_v6 = vld [vmem:[%s397_s7] sm:$0x1] }
  0x62   : > { %418 = vst [vmem:[#allocation2 + $0x6] sm:$0x1] %v417_v6 }
  0x63   : > { %443 = vsyncadd [#allocation3 + $0x6], 16  ;;  %s444_s9 = sadd.s32 7, %s960_s29 }
  0x64   : > { %s445_s10 = sld [smem:[#allocation5 + %s444_s9]] }
  0x6a   : > { %s446_s13 = scalar_lea.vmem %s1055_s1, %s445_s10 }
  0x6b   : > { %v466_v7 = vld [vmem:[%s446_s13] sm:$0x1] }
  0x6c   : > { %467 = vst [vmem:[#allocation2 + $0x7] sm:$0x1] %v466_v7 }
  0x6d   : > { %492 = vsyncadd [#allocation3 + $0x7], 16 }
  0x6e   : > { %849 = dma.done.wait [#allocation3], 16 }
  0x6f   : > { %850 = vsyncadd [#allocation3], 4294967280 }
  0x70   : > { %851 = dma.done.wait [#allocation3 + $0x1], 16 }
  0x71   : > { %852 = vsyncadd [#allocation3 + $0x1], 4294967280 }
  0x72   : > { %853 = dma.done.wait [#allocation3 + $0x2], 16 }
  0x73   : > { %854 = vsyncadd [#allocation3 + $0x2], 4294967280 }
  0x74   : > { %855 = dma.done.wait [#allocation3 + $0x3], 16 }
  0x75   : > { %856 = vsyncadd [#allocation3 + $0x3], 4294967280 }
  0x76   : > { %857 = dma.done.wait [#allocation3 + $0x4], 16 }
  0x77   : > { %858 = vsyncadd [#allocation3 + $0x4], 4294967280 }
  0x78   : > { %859 = dma.done.wait [#allocation3 + $0x5], 16 }
  0x79   : > { %860 = vsyncadd [#allocation3 + $0x5], 4294967280 }
  0x7a   : > { %861 = dma.done.wait [#allocation3 + $0x6], 16 }
  0x7b   : > { %862 = vsyncadd [#allocation3 + $0x6], 4294967280 }
  0x7c   : > { %863 = dma.done.wait [#allocation3 + $0x7], 16 }
  0x7d   : > { %864 = vsyncadd [#allocation3 + $0x7], 4294967280  ;;  %s740_s29 = sshll.u32 %s931_s20, 7  ;;  %s537_s14 = sshll.u32 %s102_s8, 4  ;;  %v518_v8 = vld [vmem:[#allocation2] sm:$0xff]  ;;  %vm521_vm0 = vcmask 261120   ;;  %s1010_s14 = int_to_ptr.vmem [resolvable:$true] %s537_s14 }
  0x7e   : > { %v519_v9 = vld [vmem:[%s1056_s2] sm:$0xff]  ;;  %s1008_s24 = scalar_lea.hbm %s1057_s3, %s740_s29  ;;  %s524_s20 = scalar_lea.sflag [#allocation7], %s100_s28 }
  0x7f   : > { %v520_v10 = vadd.f32 %v519_v9, %v518_v8  ;;  %s803_s4 = scalar_lea.vmem %s1010_s14, 128  ;;  %s886_s5 = smov [#allocation6]  }
  0x80   : > { %p804_p1 = scmp.ne.s32.totalorder %s1010_s14, %s803_s4  ;;  %s807_s6 = sshll.u32 %s886_s5, 4  ;;  %s808_s6 = int_to_ptr.vmem [resolvable:$false] %s807_s6 }
  0x81   : > { %522 = vst.msk [vmem:[%s102_s8] sm:$0xff] %vm521_vm0, %v520_v10  ;;  %s809_s7 = scalar_lea.vmem %s808_s6, 256  ;;  %p810_p4 = scmp.lt.s32.totalorder %s1010_s14, %s808_s6 }
  0x82   : > { %p805_p2 = pnand %p804_p1, %p948_p10  ;;  %p811_p5 = scmp.lt.s32.totalorder %s809_s7, %s803_s4 }
  0x84   : > { %p806_p3 = pneg %p805_p2  ;;  %p812_p6 = por %p811_p5, %p810_p4 }
  0x86   : > { %p813_p7 = pnand %p812_p6, %p806_p3 }
  0x88   : > { %816 = shalt.err (!%p813_p7)
}
  0x89   : > { %s817_s28 = scalar_lea.hbm %s1008_s24, 128  ;;  %s821_s9 = scalar_lea.hbm %s1057_s3, 256 }
  0x8a   : > { %p818_p8 = scmp.ne.s32.totalorder %s1008_s24, %s817_s28  ;;  %p822_p13 = scmp.lt.u32.totalorder %s1008_s24, %s1057_s3 }
  0x8b   : > { %p823_p0 = scmp.lt.u32.totalorder %s821_s9, %s817_s28  ;;  %p825_p2 = scmp.lt.u32.totalorder %s817_s28, %s1008_s24 }
  0x8c   : > { %p819_p9 = pnand %p818_p8, %p948_p10 }
  0x8d   : > { %p824_p1 = por %p823_p0, %p822_p13 }
  0x8e   : > { %p820_p12 = pneg %p819_p9 }
  0x8f   : > { %p826_p3 = por %p825_p2, %p824_p1 }
  0x91   : > { %p827_p4 = pnand %p826_p3, %p820_p12 }
  0x93   : > { %830 = shalt.err (!%p827_p4)
}
  0x94   : > { %751 = dma.vmem_to_hbm [thread:$0]  (%p948_p10), %s1010_s14, 128, %s1008_s24, %s524_s20  }
  0x95 PF: > { %p757_p5 = scmp.ge.s32.totalorder %s883_s19, 2  ;;  %s549_s12 = sand.u32 1, %s871_s17  }
  0x96   : > { %s550_s13 = scalar_lea.sflag [#allocation7], %s549_s12 }
  0x97   : > { %p754_p6 = pnand %p757_p5, %p952_p11 }
  0x99   : > { %866 = dma.done.wait (!%p754_p6), %s550_s13, 128  }
  0x9a   : > { %868 = vsyncadd (!%p754_p6), %s550_s13, 4294967168  ;;  %p19_p7 = scmp.ge.s32.totalorder %s935_s22, 4   ;;  %s1060_s17 = smov %s875_s18 }
  0x9b   : > { %s1061_s18 = smov %s879_s0  ;;  %s1062_s0 = smov %s946_s25 }
  0x9c   : > { %s1063_s19 = smov %s935_s22  ;;  %21 = sbr.rel (!%p19_p7) target bundleno = 18 (0x12), region = 405 }
  0xa3   :  { %555 = vsyncpa [#allocation7], 1 }
  0xa4   :  { %557 = vsyncpa [#allocation7 + $0x1], 1 }
  0xa5   :  { %558 = vsyncmov [#allocation3] }
  0xa8   :  { %s559_s19 = vpop.sfrf %558 }
  0xa9   :  { %p743_p10 = scmp.ne.s32.totalorder %s559_s19, 0 }
  0xab   :  { %563 = shalt.err (%p743_p10)  }
  0xac   :  { %565 = vsyncmov [#allocation3 + $0x1] }
  0xaf   :  { %s566_s26 = vpop.sfrf %565 }
  0xb0   :  { %p744_p11 = scmp.ne.s32.totalorder %s566_s26, 0 }
  0xb2   :  { %570 = shalt.err (%p744_p11)  }
  0xb3   :  { %572 = vsyncmov [#allocation3 + $0x2] }
  0xb6   :  { %s573_s27 = vpop.sfrf %572 }
  0xb7   :  { %p745_p8 = scmp.ne.s32.totalorder %s573_s27, 0 }
  0xb9   :  { %577 = shalt.err (%p745_p8)  }
  0xba   :  { %579 = vsyncmov [#allocation3 + $0x3] }
  0xbd   :  { %s580_s29 = vpop.sfrf %579 }
  0xbe   :  { %p746_p9 = scmp.ne.s32.totalorder %s580_s29, 0 }
  0xc0   :  { %584 = shalt.err (%p746_p9)  }
  0xc1   :  { %586 = vsyncmov [#allocation3 + $0x4] }
  0xc4   :  { %s587_s22 = vpop.sfrf %586 }
  0xc5   :  { %p747_p12 = scmp.ne.s32.totalorder %s587_s22, 0 }
  0xc7   :  { %591 = shalt.err (%p747_p12)  }
  0xc8   :  { %593 = vsyncmov [#allocation3 + $0x5] }
  0xcb   :  { %s594_s1 = vpop.sfrf %593 }
  0xcc   :  { %p748_p13 = scmp.ne.s32.totalorder %s594_s1, 0 }
  0xce   :  { %598 = shalt.err (%p748_p13)  }
  0xcf   :  { %600 = vsyncmov [#allocation3 + $0x6] }
  0xd2   :  { %s601_s2 = vpop.sfrf %600 }
  0xd3   :  { %p749_p0 = scmp.ne.s32.totalorder %s601_s2, 0 }
  0xd5   :  { %605 = shalt.err (%p749_p0)  }
  0xd6   :  { %607 = vsyncmov [#allocation3 + $0x7] }
  0xd9   :  { %s608_s3 = vpop.sfrf %607 }
  0xda   :  { %p750_p1 = scmp.ne.s32.totalorder %s608_s3, 0 }
  0xdc   :  { %612 = shalt.err (%p750_p1)  }

</bundles_post_ra>
